<compile_context>
chip_gen: v7x
topology: tpu7x:2x2x1
jax: 0.10.0
libtpu: 0.0.40
codegen_flags: <defaults>
</compile_context>

<pallas_src>
import math
import functools

import jax
import jax.numpy as jnp
from jax.experimental import pallas as pl
from jax.experimental.pallas import tpu as pltpu


# ----------------------------------------------------------------------------
# Pallas kernel: whole PLSTM cell, two fused matmuls + elementwise gates
# ----------------------------------------------------------------------------
def plstm_cell_kernel(x_ref, hx_ref, cx_ref, wx_ref, wh_ref, b_ref, summat_ref,
                      hy_ref, cy_ref, *, hidden_size, parts):
    # x_ref:      (Bt, parts*In)   flat input (torch layout, no per-part reshape)
    # hx_ref:     (Bt, H)
    # cx_ref:     (Bt, parts*H)    flat previous cell state
    # wx_ref:     (parts*In, 3*parts*H + H)   packed x-side weights
    # wh_ref:     (H,        3*parts*H + H)   packed h-side weights
    # b_ref:      (1,        3*parts*H + H)   packed biases
    # summat_ref: (parts*H, H)     tiled identity (sum over parts via MXU)
    # hy_ref:     (Bt, H)
    # cy_ref:     (Bt, parts*H)    flat new cell state (== torch.cat(cy, dim=1))
    H = hidden_size
    PH = parts * H

    pre = (jnp.dot(x_ref[...], wx_ref[...], preferred_element_type=jnp.float32)
           + jnp.dot(hx_ref[...], wh_ref[...], preferred_element_type=jnp.float32)
           + b_ref[...])                                     # (Bt, 3*PH + H), f32

    ingate     = jax.nn.sigmoid(pre[:, 0 * PH:1 * PH])       # (Bt, PH) lane-aligned
    forgetgate = jax.nn.sigmoid(pre[:, 1 * PH:2 * PH])
    cellgate   = jnp.tanh(pre[:, 2 * PH:3 * PH])
    outgate    = jax.nn.sigmoid(pre[:, 3 * PH:3 * PH + H])   # (Bt, H)

    cy = forgetgate * cx_ref[...].astype(jnp.float32) + ingate * cellgate  # (Bt, PH)
    cy_ref[...] = cy.astype(cy_ref.dtype)

    # sum over parts: cy @ [I_H; I_H; ...] -> (Bt, H), stays on the MXU
    cy_sum = jnp.dot(cy, summat_ref[...].astype(jnp.float32),
                     preferred_element_type=jnp.float32)
    hy_ref[...] = (outgate * jnp.tanh(cy_sum)).astype(hy_ref.dtype)


# ----------------------------------------------------------------------------
# Wrapper: no reshapes/transposes on activations, optional batch grid
# ----------------------------------------------------------------------------
def plstm_cell(x, hx, cx, packed, *, hidden_size, parts, block_b=None):
    """x: (B, parts*In), hx: (B, H), cx: (B, parts*H) -> (hy (B,H), cy (B, parts*H))."""
    wx, wh, b, summat = packed
    B = x.shape[0]
    K_x = x.shape[1]                    # parts*In
    H = hidden_size
    PH = parts * H
    N = 3 * PH + H

    if block_b is None:
        block_b = B if B <= 1024 else 1024
    grid = (pl.cdiv(B, block_b),)

    kern = functools.partial(plstm_cell_kernel, hidden_size=H, parts=parts)

    hy, cy = pl.pallas_call(
        kern,
        out_shape=(jax.ShapeDtypeStruct((B, H), x.dtype),
                   jax.ShapeDtypeStruct((B, PH), x.dtype)),
        grid=grid,
        in_specs=[pl.BlockSpec((block_b, K_x), lambda i: (i, 0)),   # x tile
                  pl.BlockSpec((block_b, H),   lambda i: (i, 0)),   # hx tile
                  pl.BlockSpec((block_b, PH),  lambda i: (i, 0)),   # cx tile
                  pl.BlockSpec((K_x, N),       lambda i: (0, 0)),   # Wx (resident)
                  pl.BlockSpec((H, N),         lambda i: (0, 0)),   # Wh (resident)
                  pl.BlockSpec((1, N),         lambda i: (0, 0)),   # bias
                  pl.BlockSpec((PH, H),        lambda i: (0, 0))],  # sum matrix
        out_specs=(pl.BlockSpec((block_b, H),  lambda i: (i, 0)),
                   pl.BlockSpec((block_b, PH), lambda i: (i, 0))),
        compiler_params=pltpu.CompilerParams(dimension_semantics=("parallel",)),
    )(x, hx, cx, wx, wh, b, summat)
    return hy, cy


# ----------------------------------------------------------------------------
# Parameter init (mirrors PLSTMCell.reset_parameters, torch-native layouts)
# ----------------------------------------------------------------------------
def init_params(key, input_size, hidden_size, parts, num_chunks=3, dtype=jnp.float32):
    stdv = 1.0 / math.sqrt(hidden_size)
    ks = jax.random.split(key, 8)
    u = lambda k, shape: jax.random.uniform(k, shape, dtype, minval=-stdv, maxval=stdv)
    w_px = u(ks[0], (parts, num_chunks * hidden_size, input_size))   # (3H, In) per part
    b_px = u(ks[1], (parts, num_chunks * hidden_size))
    w_ph = u(ks[2], (parts, num_chunks * hidden_size, hidden_size))  # (3H, H) per part
    b_ph = u(ks[3], (parts, num_chunks * hidden_size))
    w_ox = u(ks[4], (hidden_size, input_size))
    b_ox = u(ks[5], (hidden_size,))
    w_oh = u(ks[6], (hidden_size, hidden_size))
    b_oh = u(ks[7], (hidden_size,))
    return (w_px, b_px, w_ph, b_ph, w_ox, b_ox, w_oh, b_oh)


# ----------------------------------------------------------------------------
# One-time packing of torch-layout params into the fused kernel layout
# ----------------------------------------------------------------------------
def pack_params(raw, input_size, hidden_size, parts):
    w_px, b_px, w_ph, b_ph, w_ox, b_ox, w_oh, b_oh = raw
    In, H = input_size, hidden_size
    PH = parts * H
    N = 3 * PH + H                     # [ ingates | forgets | cellgates | outgate ]
    dtype = w_px.dtype

    wx = jnp.zeros((parts * In, N), dtype)
    wh = jnp.zeros((H, N), dtype)
    b = jnp.zeros((N,), dtype)
    for p in range(parts):
        for g in range(3):             # 0=ingate, 1=forgetgate, 2=cellgate
            cols = slice(g * PH + p * H, g * PH + (p + 1) * H)
            wx = wx.at[p * In:(p + 1) * In, cols].set(w_px[p, g * H:(g + 1) * H, :].T)
            wh = wh.at[:, cols].set(w_ph[p, g * H:(g + 1) * H, :].T)
            b = b.at[cols].set(b_px[p, g * H:(g + 1) * H] + b_ph[p, g * H:(g + 1) * H])
        # output gate x-term: every part's x-rows carry w_ox (== sum_p xp @ w_ox^T)
        wx = wx.at[p * In:(p + 1) * In, 3 * PH:].set(w_ox.T)
    wh = wh.at[:, 3 * PH:].set(w_oh.T)
    b = b.at[3 * PH:].set(b_oh + parts * b_ox)   # b_ox added once per part (matches torch)

    summat = jnp.tile(jnp.eye(H, dtype=dtype), (parts, 1))  # (PH, H)
    return wx, wh, b[None, :], summat


# ----------------------------------------------------------------------------
# Pure-JAX reference (literal transcription of the torch code) for validation
# ----------------------------------------------------------------------------
def plstm_cell_ref(x, hx, cx, raw):
    w_px, b_px, w_ph, b_ph, w_ox, b_ox, w_oh, b_oh = raw
    parts = w_px.shape[0]
    H = w_oh.shape[0]
    xs = jnp.split(x, parts, axis=1)
    cxs = jnp.split(cx, parts, axis=1)
    cy = []
    for p in range(parts):
        gates = xs[p] @ w_px[p].T + hx @ w_ph[p].T + b_px[p] + b_ph[p]
        i = jax.nn.sigmoid(gates[:, :H])
        f = jax.nn.sigmoid(gates[:, H:2 * H])
        g = jnp.tanh(gates[:, 2 * H:])
        cy.append(f * cxs[p] + i * g)
    og = sum(xs[p] @ w_ox.T + b_ox for p in range(parts)) + hx @ w_oh.T + b_oh
    hy = jax.nn.sigmoid(og) * jnp.tanh(sum(cy))
    return hy, jnp.concatenate(cy, axis=1)


if __name__ == "__main__":
    B, In, H, parts = 8, 16, 32, 4      # full input dim = parts*In = 64, parts*H = 128

    key = jax.random.PRNGKey(0)
    kx, kh, kc, kp = jax.random.split(key, 4)
    x = jax.random.normal(kx, (B, parts * In), jnp.float32)
    hx = jax.random.normal(kh, (B, H), jnp.float32)
    cx = jax.random.normal(kc, (B, parts * H), jnp.float32)

    raw = init_params(kp, In, H, parts)
    packed = pack_params(raw, In, H, parts)

    fwd = jax.jit(functools.partial(plstm_cell, hidden_size=H, parts=parts))
    hy, cy = fwd(x, hx, cx, packed)
    jax.block_until_ready((hy, cy))

    hy_ref, cy_ref = plstm_cell_ref(x, hx, cx, raw)
    assert hy.shape == (B, H) and cy.shape == (B, parts * H)
    assert jnp.allclose(hy, hy_ref, atol=1e-5, rtol=1e-5)
    assert jnp.allclose(cy, cy_ref, atol=1e-5, rtol=1e-5)

    print("KERNEL_OK")
</pallas_src>

<mosaic_0001>
module attributes {stable_mosaic.version = 11 : i64} {
  func.func @plstm_cell_kernel(%arg0: i32, %arg1: memref<8x64xf32, #tpu.memory_space<vmem>>, %arg2: memref<8x32xf32, #tpu.memory_space<vmem>>, %arg3: memref<8x128xf32, #tpu.memory_space<vmem>>, %arg4: memref<64x416xf32, #tpu.memory_space<vmem>>, %arg5: memref<32x416xf32, #tpu.memory_space<vmem>>, %arg6: memref<1x416xf32, #tpu.memory_space<vmem>>, %arg7: memref<128x32xf32, #tpu.memory_space<vmem>>, %arg8: memref<8x32xf32, #tpu.memory_space<vmem>>, %arg9: memref<8x128xf32, #tpu.memory_space<vmem>>) attributes {dimension_semantics = [#tpu.dimension_semantics<parallel>], iteration_bounds = array<i64: 1>, scalar_prefetch = 0 : i64, scratch_operands = 0 : i64, tpu.core_type = #tpu.core_type<tc>, window_params = [{transform_indices = @transform_0, window_bounds = array<i64: 8, 64>}, {transform_indices = @transform_1, window_bounds = array<i64: 8, 32>}, {transform_indices = @transform_2, window_bounds = array<i64: 8, 128>}, {pipeline_mode = #tpu.pipeline_mode<synchronous>, transform_indices = @transform_3, window_bounds = array<i64: 64, 416>}, {pipeline_mode = #tpu.pipeline_mode<synchronous>, transform_indices = @transform_4, window_bounds = array<i64: 32, 416>}, {pipeline_mode = #tpu.pipeline_mode<synchronous>, transform_indices = @transform_5, window_bounds = array<i64: 1, 416>}, {pipeline_mode = #tpu.pipeline_mode<synchronous>, transform_indices = @transform_6, window_bounds = array<i64: 128, 32>}, {transform_indices = @transform_7, window_bounds = array<i64: 8, 32>}, {transform_indices = @transform_8, window_bounds = array<i64: 8, 128>}]} {
    %c0 = arith.constant 0 : index
    %c0_0 = arith.constant 0 : index
    %0 = vector.load %arg1[%c0, %c0_0] : memref<8x64xf32, #tpu.memory_space<vmem>>, vector<8x64xf32>
    %c0_1 = arith.constant 0 : index
    %c0_2 = arith.constant 0 : index
    %1 = vector.load %arg4[%c0_1, %c0_2] : memref<64x416xf32, #tpu.memory_space<vmem>>, vector<64x416xf32>
    %cst = arith.constant dense<0.000000e+00> : vector<8x416xf32>
    %2 = tpu.matmul %0, %1, %cst {dimension_numbers = #tpu.dot_dimension_numbers<[1], [0], [0], [1], [0, 0, 1, 1], [], []>} : vector<8x64xf32>, vector<64x416xf32>, vector<8x416xf32> -> vector<8x416xf32>
    %c0_3 = arith.constant 0 : index
    %c0_4 = arith.constant 0 : index
    %3 = vector.load %arg2[%c0_3, %c0_4] : memref<8x32xf32, #tpu.memory_space<vmem>>, vector<8x32xf32>
    %c0_5 = arith.constant 0 : index
    %c0_6 = arith.constant 0 : index
    %4 = vector.load %arg5[%c0_5, %c0_6] : memref<32x416xf32, #tpu.memory_space<vmem>>, vector<32x416xf32>
    %cst_7 = arith.constant dense<0.000000e+00> : vector<8x416xf32>
    %5 = tpu.matmul %3, %4, %cst_7 {dimension_numbers = #tpu.dot_dimension_numbers<[1], [0], [0], [1], [0, 0, 1, 1], [], []>} : vector<8x32xf32>, vector<32x416xf32>, vector<8x416xf32> -> vector<8x416xf32>
    %6 = arith.addf %2, %5 : vector<8x416xf32>
    %c0_8 = arith.constant 0 : index
    %c0_9 = arith.constant 0 : index
    %7 = vector.load %arg6[%c0_8, %c0_9] : memref<1x416xf32, #tpu.memory_space<vmem>>, vector<1x416xf32>
    %8 = vector.broadcast %7 : vector<1x416xf32> to vector<8x416xf32>
    %9 = arith.addf %6, %8 : vector<8x416xf32>
    %10 = vector.extract_strided_slice %9 {offsets = [0, 0], sizes = [8, 128], strides = [1, 1]} : vector<8x416xf32> to vector<8x128xf32>
    %11 = arith.negf %10 : vector<8x128xf32>
    %12 = math.exp %11 : vector<8x128xf32>
    %cst_10 = arith.constant 1.000000e+00 : f32
    %13 = vector.broadcast %cst_10 : f32 to vector<8x128xf32>
    %14 = arith.addf %13, %12 : vector<8x128xf32>
    %15 = arith.divf %13, %14 : vector<8x128xf32>
    %16 = vector.extract_strided_slice %9 {offsets = [0, 128], sizes = [8, 128], strides = [1, 1]} : vector<8x416xf32> to vector<8x128xf32>
    %17 = arith.negf %16 : vector<8x128xf32>
    %18 = math.exp %17 : vector<8x128xf32>
    %cst_11 = arith.constant 1.000000e+00 : f32
    %19 = vector.broadcast %cst_11 : f32 to vector<8x128xf32>
    %20 = arith.addf %19, %18 : vector<8x128xf32>
    %21 = arith.divf %19, %20 : vector<8x128xf32>
    %22 = vector.extract_strided_slice %9 {offsets = [0, 256], sizes = [8, 128], strides = [1, 1]} : vector<8x416xf32> to vector<8x128xf32>
    %23 = math.tanh %22 : vector<8x128xf32>
    %24 = vector.extract_strided_slice %9 {offsets = [0, 384], sizes = [8, 32], strides = [1, 1]} : vector<8x416xf32> to vector<8x32xf32>
    %25 = arith.negf %24 : vector<8x32xf32>
    %26 = math.exp %25 : vector<8x32xf32>
    %cst_12 = arith.constant 1.000000e+00 : f32
    %27 = vector.broadcast %cst_12 : f32 to vector<8x32xf32>
    %28 = arith.addf %27, %26 : vector<8x32xf32>
    %29 = arith.divf %27, %28 : vector<8x32xf32>
    %c0_13 = arith.constant 0 : index
    %c0_14 = arith.constant 0 : index
    %30 = vector.load %arg3[%c0_13, %c0_14] : memref<8x128xf32, #tpu.memory_space<vmem>>, vector<8x128xf32>
    %31 = arith.mulf %21, %30 : vector<8x128xf32>
    %32 = arith.mulf %15, %23 : vector<8x128xf32>
    %33 = arith.addf %31, %32 : vector<8x128xf32>
    %c0_15 = arith.constant 0 : index
    %c0_16 = arith.constant 0 : index
    %34 = vector.load %arg9[%c0_15, %c0_16] : memref<8x128xf32, #tpu.memory_space<vmem>>, vector<8x128xf32>
    tpu.vector_store %arg9[%c0_15, %c0_16], %33 {strides = array<i32>} : memref<8x128xf32, #tpu.memory_space<vmem>>, vector<8x128xf32>,
    %c0_17 = arith.constant 0 : index
    %c0_18 = arith.constant 0 : index
    %35 = vector.load %arg7[%c0_17, %c0_18] : memref<128x32xf32, #tpu.memory_space<vmem>>, vector<128x32xf32>
    %cst_19 = arith.constant dense<0.000000e+00> : vector<8x32xf32>
    %36 = tpu.matmul %33, %35, %cst_19 {dimension_numbers = #tpu.dot_dimension_numbers<[1], [0], [0], [1], [0, 0, 1, 1], [], []>} : vector<8x128xf32>, vector<128x32xf32>, vector<8x32xf32> -> vector<8x32xf32>
    %37 = math.tanh %36 : vector<8x32xf32>
    %38 = arith.mulf %29, %37 : vector<8x32xf32>
    %c0_20 = arith.constant 0 : index
    %c0_21 = arith.constant 0 : index
    %39 = vector.load %arg8[%c0_20, %c0_21] : memref<8x32xf32, #tpu.memory_space<vmem>>, vector<8x32xf32>
    tpu.vector_store %arg8[%c0_20, %c0_21], %38 {strides = array<i32>} : memref<8x32xf32, #tpu.memory_space<vmem>>, vector<8x32xf32>,
    return
  }
  func.func @transform_0(%arg0: i32) -> (i32, i32) {
    %c0_i32 = arith.constant 0 : i32
    %c0_i32_0 = arith.constant 0 : i32
    return %arg0, %c0_i32 : i32, i32
  }
  func.func @transform_1(%arg0: i32) -> (i32, i32) {
    %c0_i32 = arith.constant 0 : i32
    %c0_i32_0 = arith.constant 0 : i32
    return %arg0, %c0_i32 : i32, i32
  }
  func.func @transform_2(%arg0: i32) -> (i32, i32) {
    %c0_i32 = arith.constant 0 : i32
    %c0_i32_0 = arith.constant 0 : i32
    return %arg0, %c0_i32 : i32, i32
  }
  func.func @transform_3(%arg0: i32) -> (i32, i32) {
    %c0_i32 = arith.constant 0 : i32
    %c0_i32_0 = arith.constant 0 : i32
    %c0_i32_1 = arith.constant 0 : i32
    return %c0_i32, %c0_i32_0 : i32, i32
  }
  func.func @transform_4(%arg0: i32) -> (i32, i32) {
    %c0_i32 = arith.constant 0 : i32
    %c0_i32_0 = arith.constant 0 : i32
    %c0_i32_1 = arith.constant 0 : i32
    return %c0_i32, %c0_i32_0 : i32, i32
  }
  func.func @transform_5(%arg0: i32) -> (i32, i32) {
    %c0_i32 = arith.constant 0 : i32
    %c0_i32_0 = arith.constant 0 : i32
    %c0_i32_1 = arith.constant 0 : i32
    return %c0_i32, %c0_i32_0 : i32, i32
  }
  func.func @transform_6(%arg0: i32) -> (i32, i32) {
    %c0_i32 = arith.constant 0 : i32
    %c0_i32_0 = arith.constant 0 : i32
    %c0_i32_1 = arith.constant 0 : i32
    return %c0_i32, %c0_i32_0 : i32, i32
  }
  func.func @transform_7(%arg0: i32) -> (i32, i32) {
    %c0_i32 = arith.constant 0 : i32
    %c0_i32_0 = arith.constant 0 : i32
    return %arg0, %c0_i32 : i32, i32
  }
  func.func @transform_8(%arg0: i32) -> (i32, i32) {
    %c0_i32 = arith.constant 0 : i32
    %c0_i32_0 = arith.constant 0 : i32
    return %arg0, %c0_i32 : i32, i32
  }
}

</mosaic_0001>

<bundles_post_ra>
// kernel: plstm_cell.1
= control target key start
LH: loop header
LB: loop body
LE: loop exit
PB: predicated region body
PF: predicated region fallthrough
CT: control target
= control target key end

     0   :  { %14 = vsyncpa [#allocation3], 0  ;;  %s992_s0 = inlined_call_operand.vmem [shape: f32[8,64], index: 0, kind: input, shape index: {}]   ;;  %s993_s1 = inlined_call_operand.vmem [shape: f32[8,32], index: 1, kind: input, shape index: {}]   ;;  %s994_s2 = inlined_call_operand.vmem [shape: f32[8,128], index: 2, kind: input, shape index: {}]   ;;  %s995_s3 = inlined_call_operand.hbm [shape: f32[64,416], index: 3, kind: input, shape index: {}]   ;;  %s996_s4 = inlined_call_operand.vmem [shape: f32[32,416], index: 4, kind: input, shape index: {}]   ;;  %s997_s5 = inlined_call_operand.vmem [shape: f32[1,416], index: 5, kind: input, shape index: {}]   ;;  %s998_s6 = inlined_call_operand.vmem [shape: f32[128,32], index: 6, kind: input, shape index: {}]   ;;  %s999_s7 = inlined_call_operand.hbm [shape: f32[8,32], index: 7, kind: output, shape index: {0}]   ;;  %s1000_s8 = inlined_call_operand.hbm [shape: f32[8,128], index: 8, kind: output, shape index: {1}]  }
   0x1   :  { %15 = vsyncpa [#allocation4], 0 }
   0x2   :  { %16 = vsyncpa [#allocation7], 0  ;;  %s785_s27 = smov [#allocation2]   ;;  %s713_s9 = scalar_lea.hbm %s995_s3, 4096 }
   0x3   :  { %s28_s28 = sshll.u32 %s785_s27, 4  ;;  %p714_p0 = scmp.ne.s32.totalorder %s995_s3, %s713_s9  ;;  %s29_s28 = int_to_ptr.vmem [resolvable:$true] %s28_s28 }
   0x4   :  { %p717_p1 = scmp.lt.u32.totalorder %s713_s9, %s995_s3 }
   0x6   :  { %p719_p2 = pnand %p717_p1, %p714_p0 }
   0x8   :  { %722 = shalt.err (!%p719_p2)
}
   0x9   :  { %s723_s14 = scalar_lea.vmem %s29_s28, 4096  ;;  %p728_p4 = scmp.lt.s32.totalorder %s29_s28, %s29_s28 }
   0xa   :  { %p724_p3 = scmp.ne.s32.totalorder %s29_s28, %s723_s14  ;;  %p729_p5 = scmp.lt.s32.totalorder %s723_s14, %s723_s14 }
   0xc   :  { %p730_p6 = por %p729_p5, %p728_p4 }
   0xe   :  { %p731_p7 = pnand %p730_p6, %p724_p3 }
  0x10   :  { %734 = shalt.err (!%p731_p7)
}
  0x11   :  { %s786_s15 = smov 512   ;;  %s787_s16 = smov 32  }
  0x12   :  { %34 = dma.hbm_to_vmem [thread:$0]  %s995_s3, 4096, %s29_s28, [#allocation3], %s786_s15, %s786_s15, %s787_s16  }
  0x13   :  { %779 = dma.done.wait [#allocation3], 4096  }
  0x14   :  { %780 = vsyncadd [#allocation3], 4294963200  ;;  %v788_v0 = vmov 0.0   ;;  %v81_v1 = vld [vmem:[%s996_s4 + $0x18] sm:$0xff]  ;;  %v80_v3 = vld [vmem:[%s996_s4 + $0x10] sm:$0xff]  ;;  %vm94_vm0 = vcmask 261120  }
  0x15   :  { %233 = vmatprep.mubr.f32.mxu1 %v788_v0  ;;  %162 = vmatprep.mubr.f32.mxu0 %v788_v0  ;;  %v85_v2 = vld [vmem:[%s996_s4 + $0x38] sm:$0xff]  ;;  %v84_v5 = vld [vmem:[%s996_s4 + $0x30] sm:$0xff]  ;;  %v46_v12 = vld [vmem:[#allocation2 + $0x8] sm:$0xff]  ;;  %vm240_vm1 = vcmask 523264   ;;  %vm790_vm2 = vmmov 0   ;;  %s791_s14 = smov [#allocation6]  }
  0x16   :  { %v621_v4 = vpack.c.bf16 %v85_v2, %v81_v1  ;;  %v89_v6 = vld [vmem:[%s996_s4 + $0x58] sm:$0xff]  ;;  %v623_v8 = vpack.c.bf16 %v84_v5, %v80_v3  ;;  %v88_v10 = vld [vmem:[%s996_s4 + $0x50] sm:$0xff]  ;;  %v50_v13 = vld [vmem:[#allocation2 + $0x28] sm:$0xff]  ;;  %s541_s15 = sshll.u32 %s791_s14, 4  ;;  %s542_s15 = int_to_ptr.vmem [resolvable:$true] %s541_s15 }
  0x17   :  { %v93_v7 = vld [vmem:[%s996_s4 + $0x78] sm:$0xff]  ;;  %v92_v11 = vld [vmem:[%s996_s4 + $0x70] sm:$0xff]  ;;  %v45_v15 = vld [vmem:[#allocation2] sm:$0xff]  ;;  %v629_v17 = vpack.c.bf16 %v50_v13, %v46_v12  ;;  %s735_s16 = scalar_lea.vmem %s542_s15, 128  ;;  %p740_p9 = scmp.lt.s32.totalorder %s542_s15, %s542_s15 }
  0x18   :  { %v625_v9 = vpack.c.bf16 %v93_v7, %v89_v6  ;;  %622 = vmatprep.subr.bf16.mxu1 %v621_v4  ;;  %v627_v14 = vpack.c.bf16 %v92_v11, %v88_v10  ;;  %v49_v16 = vld [vmem:[#allocation2 + $0x20] sm:$0xff]  ;;  %v54_v18 = vld [vmem:[#allocation2 + $0x48] sm:$0xff]  ;;  %v48_v49 = vld [vmem:[#allocation2 + $0x18] sm:$0xff]  ;;  %p736_p8 = scmp.ne.s32.totalorder %s542_s15, %s735_s16  ;;  %p741_p10 = scmp.lt.s32.totalorder %s735_s16, %s735_s16 }
  0x19   :  { %624 = vmatpush1.bf16.msra.mxu1 %v623_v8  ;;  %v58_v19 = vld [vmem:[#allocation2 + $0x68] sm:$0xff]  ;;  %v78_v22 = vld [vmem:[%s996_s4] sm:$0xff]  ;;  %v631_v27 = vpack.c.bf16 %v49_v16, %v45_v15  ;;  %v52_v50 = vld [vmem:[#allocation2 + $0x38] sm:$0xff]  ;;  %v789_v15 = vmov 0.0|0.0  }
  0x1a   :  { %626 = vmatprep.subr.bf16.mxu1 %v625_v9  ;;  %v79_v20 = vld [vmem:[%s996_s4 + $0x8] sm:$0xff]  ;;  %v82_v23 = vld [vmem:[%s996_s4 + $0x20] sm:$0xff]  ;;  %v633_v31 = vpack.c.bf16 %v58_v19, %v54_v18  ;;  %v645_v52 = vpack.c.bf16 %v52_v50, %v48_v49  ;;  %v47_v53 = vld [vmem:[#allocation2 + $0x10] sm:$0xff]  ;;  %v388_v19 = vlaneseq  ;;  %p742_p11 = por %p741_p10, %p740_p9 }
  0x1b   :  { %v83_v21 = vld [vmem:[%s996_s4 + $0x28] sm:$0xff]  ;;  %v77_v24 = vld [vmem:[%s993_s1] sm:$0xff]  ;;  %v615_v26 = vpack.c.bf16 %v82_v23, %v78_v22  ;;  %v51_v54 = vld [vmem:[#allocation2 + $0x30] sm:$0xff] }
  0x1c   :  { %v613_v25 = vpack.c.bf16 %v83_v21, %v79_v20  ;;  %v53_v28 = vld [vmem:[#allocation2 + $0x40] sm:$0xff]  ;;  %v87_v29 = vld [vmem:[%s996_s4 + $0x48] sm:$0xff]  ;;  %v56_v55 = vld [vmem:[#allocation2 + $0x58] sm:$0xff]  ;;  %v647_v58 = vpack.c.bf16 %v51_v54, %v47_v53  ;;  %v389_v23 = vshrl.u32 %v388_v19, 7  ;;  %p743_p12 = pnand %p742_p11, %p736_p8 }
  0x1d   :  { %628 = vmatpush1.bf16.msra.mxu1 %v627_v14  ;;  %v91_v30 = vld [vmem:[%s996_s4 + $0x68] sm:$0xff]  ;;  %v57_v32 = vld [vmem:[#allocation2 + $0x60] sm:$0xff]  ;;  %v60_v56 = vld [vmem:[#allocation2 + $0x78] sm:$0xff] }
  0x1e   :  { %630 = vmatprep.subr.bf16.mxu1 %v629_v17  ;;  %614 = vmatprep.subr.bf16.mxu0 %v613_v25  ;;  %v617_v33 = vpack.c.bf16 %v91_v30, %v87_v29  ;;  %v86_v34 = vld [vmem:[%s996_s4 + $0x40] sm:$0xff]  ;;  %v62_v36 = vld [vmem:[#allocation2 + $0x88] sm:$0xff]  ;;  %v635_v39 = vpack.c.bf16 %v57_v32, %v53_v28  ;;  %v649_v59 = vpack.c.bf16 %v60_v56, %v56_v55  ;;  %v55_v60 = vld [vmem:[#allocation2 + $0x50] sm:$0xff]  ;;  %v398_v56 = vsub.s32 2, %v389_v23 }
  0x1f   :  { %v90_v35 = vld [vmem:[%s996_s4 + $0x60] sm:$0xff]  ;;  %616 = vmatpush1.bf16.msra.mxu0 %v615_v26  ;;  %v66_v37 = vld [vmem:[#allocation2 + $0xa8] sm:$0xff]  ;;  %v59_v61 = vld [vmem:[#allocation2 + $0x70] sm:$0xff] }
  0x20   :  { %v619_v38 = vpack.c.bf16 %v90_v35, %v86_v34  ;;  %555 = vmatmul.mubr.msk.f32.vlgmr.msra.gmra.mrb[0].mxu1 %vm94_vm0, %v77_v24  ;;  %618 = vmatprep.subr.bf16.mxu0 %v617_v33  ;;  %v637_v40 = vpack.c.bf16 %v66_v37, %v62_v36  ;;  %v61_v41 = vld [vmem:[#allocation2 + $0x80] sm:$0xff]  ;;  %v70_v43 = vld [vmem:[#allocation2 + $0xc8] sm:$0xff]  ;;  %v64_v62 = vld [vmem:[#allocation2 + $0x98] sm:$0xff]  ;;  %v651_v1 = vpack.c.bf16 %v59_v61, %v55_v60 }
  0x21   :  { %632 = vmatpush1.bf16.msra.mxu1 %v631_v27  ;;  %308 = vmatprep.mubr.f32.mxu1 %v788_v0  ;;  %v65_v42 = vld [vmem:[#allocation2 + $0xa0] sm:$0xff]  ;;  %v74_v44 = vld [vmem:[#allocation2 + $0xe8] sm:$0xff]  ;;  %v68_v63 = vld [vmem:[#allocation2 + $0xb8] sm:$0xff] }
  0x22   :  { %634 = vmatprep.subr.bf16.mxu1 %v633_v31  ;;  %v639_v45 = vpack.c.bf16 %v65_v42, %v61_v41  ;;  %v641_v46 = vpack.c.bf16 %v74_v44, %v70_v43  ;;  %v69_v47 = vld [vmem:[#allocation2 + $0xc0] sm:$0xff]  ;;  %v653_v2 = vpack.c.bf16 %v68_v63, %v64_v62  ;;  %v63_v3 = vld [vmem:[#allocation2 + $0x90] sm:$0xff]  ;;  %v72_v5 = vld [vmem:[#allocation2 + $0xd8] sm:$0xff]  ;;  %v390_v44 = vsub.s32 0, %v389_v23 }
  0x23   :  { %620 = vmatpush1.bf16.msra.mxu0 %v619_v38  ;;  %v73_v48 = vld [vmem:[#allocation2 + $0xe0] sm:$0xff]  ;;  %v67_v4 = vld [vmem:[#allocation2 + $0xb0] sm:$0xff]  ;;  %v76_v6 = vld [vmem:[#allocation2 + $0xf8] sm:$0xff] }
  0x24   :  { %v643_v51 = vpack.c.bf16 %v73_v48, %v69_v47  ;;  %v44_v57 = vld [vmem:[%s992_s0] sm:$0xff]  ;;  %v655_v7 = vpack.c.bf16 %v67_v4, %v63_v3  ;;  %v657_v8 = vpack.c.bf16 %v76_v6, %v72_v5  ;;  %v71_v9 = vld [vmem:[#allocation2 + $0xd0] sm:$0xff]  ;;  %v437_v13 = vld [vmem:[%s998_s6 + $0x8] sm:$0xff]  ;;  %661 = vmatprep.subr.bf16.mxu0 %v789_v15 }
  0x25   :  { %636 = vmatpush1.bf16.msra.mxu1 %v635_v39  ;;  %v75_v10 = vld [vmem:[#allocation2 + $0xf0] sm:$0xff]  ;;  %v436_v12 = vld [vmem:[%s998_s6] sm:$0xff]  ;;  %v439_v17 = vld [vmem:[%s998_s6 + $0x18] sm:$0xff] }
  0x26   :  { %638 = vmatprep.subr.bf16.mxu1 %v637_v40  ;;  %554 = vmatmul.mubr.msk.f32.vlgmr.msra.gmra.mrb[0].mxu0 %vm94_vm0, %v77_v24  ;;  %v659_v11 = vpack.c.bf16 %v75_v10, %v71_v9  ;;  %v662_v14 = vpack.c.bf16 %v437_v13, %v436_v12  ;;  %v438_v16 = vld [vmem:[%s998_s6 + $0x10] sm:$0xff]  ;;  %v440_v20 = vld [vmem:[%s998_s6 + $0x20] sm:$0xff]  ;;  %v441_v21 = vld [vmem:[%s998_s6 + $0x28] sm:$0xff]  ;;  %v402_v24 = vsub.s32 3, %v389_v23 }
  0x27   :  { %v665_v18 = vpack.c.bf16 %v439_v17, %v438_v16  ;;  %v668_v22 = vpack.c.bf16 %v441_v21, %v440_v20  ;;  %v442_v25 = vld [vmem:[%s998_s6 + $0x30] sm:$0xff]  ;;  %v443_v26 = vld [vmem:[%s998_s6 + $0x38] sm:$0xff]  ;;  %v386_v27 = vld [vmem:[%s997_s5] sm:$0xf]  ;;  %610 = vmatprep.mubr.msk.f32.mxu0 %vm790_vm2, %v788_v0 }
  0x28   :  { %663 = vmatpush3.bf16.msra.mxu0 %v662_v14  ;;  %v671_v28 = vpack.c.bf16 %v443_v26, %v442_v25  ;;  %v403_v29 = vrot.slane %v386_v27, %v402_v24  ;;  %v444_v30 = vld [vmem:[%s998_s6 + $0x40] sm:$0xff]  ;;  %v445_v31 = vld [vmem:[%s998_s6 + $0x48] sm:$0xff]  ;;  %v446_v33 = vld [vmem:[%s998_s6 + $0x50] sm:$0xff] }
  0x29   :  { %640 = vmatpush1.bf16.msra.mxu1 %v639_v45  ;;  %664 = vmatprep.subr.bf16.mxu0 %v789_v15  ;;  %v674_v32 = vpack.c.bf16 %v445_v31, %v444_v30  ;;  %v447_v34 = vld [vmem:[%s998_s6 + $0x58] sm:$0xff]  ;;  %v448_v36 = vld [vmem:[%s998_s6 + $0x60] sm:$0xff]  ;;  %v449_v37 = vld [vmem:[%s998_s6 + $0x68] sm:$0xff]  ;;  %v394_v45 = vsub.s32 1, %v389_v23 }
  0x2a   :  { %642 = vmatprep.subr.bf16.mxu1 %v641_v46  ;;  %v677_v35 = vpack.c.bf16 %v447_v34, %v446_v33  ;;  %v680_v38 = vpack.c.bf16 %v449_v37, %v448_v36  ;;  %v450_v39 = vld [vmem:[%s998_s6 + $0x70] sm:$0xff]  ;;  %v451_v40 = vld [vmem:[%s998_s6 + $0x78] sm:$0xff]  ;;  %v391_v46 = vrot.slane %v386_v27, %v390_v44  ;;  %v431_v3 = vld [vmem:[%s994_s2] sm:$0xff] }
  0x2b   :  { %v683_v41 = vpack.c.bf16 %v451_v40, %v450_v39  ;;  %v395_v48 = vrot.slane %v386_v27, %v394_v45 }
  0x2c   :  { %666 = vmatpush3.bf16.msra.mxu0 %v665_v18 }
  0x2d   :  { %644 = vmatpush1.bf16.msra.mxu1 %v643_v51  ;;  %667 = vmatprep.subr.bf16.mxu0 %v789_v15 }
  0x2e   :  { %646 = vmatprep.subr.bf16.mxu1 %v645_v52 }
  0x30   :  { %556 = vmatmul.mubr.msk.f32.vlgmr.msra.gmra.mrb[2].mxu1 %vm240_vm1, %v44_v57  ;;  %669 = vmatpush3.bf16.msra.mxu0 %v668_v22 }
  0x31   :  { %648 = vmatpush1.bf16.msra.mxu1 %v647_v58  ;;  %379 = vmatprep.mubr.f32.mxu1 %v788_v0 }
  0x32   :  { %650 = vmatprep.subr.bf16.mxu1 %v649_v59  ;;  %670 = vmatprep.subr.bf16.mxu0 %v789_v15 }
  0x34   :  { %672 = vmatpush3.bf16.msra.mxu0 %v671_v28 }
  0x35   :  { %652 = vmatpush1.bf16.msra.mxu1 %v651_v1  ;;  %673 = vmatprep.subr.bf16.mxu0 %v789_v15 }
  0x36   :  { %654 = vmatprep.subr.bf16.mxu1 %v653_v2 }
  0x38   :  { %675 = vmatpush3.bf16.msra.mxu0 %v674_v32 }
  0x39   :  { %656 = vmatpush1.bf16.msra.mxu1 %v655_v7  ;;  %676 = vmatprep.subr.bf16.mxu0 %v789_v15 }
  0x3a   :  { %658 = vmatprep.subr.bf16.mxu1 %v657_v8 }
  0x3c   :  { %678 = vmatpush3.bf16.msra.mxu0 %v677_v35 }
  0x3d   :  { %660 = vmatpush1.bf16.msra.mxu1 %v659_v11  ;;  %679 = vmatprep.subr.bf16.mxu0 %v789_v15 }
  0x40   :  { %557 = vmatmul.mubr.msk.f32.vlgmr.msra.gmra.mrb[0].mxu1 %vm240_vm1, %v44_v57  ;;  %681 = vmatpush3.bf16.msra.mxu0 %v680_v38  ;;  %v399_v57 = vrot.slane %v386_v27, %v398_v56 }
  0x41   :  { %682 = vmatprep.subr.bf16.mxu0 %v789_v15 }
  0x44   :  { %684 = vmatpush3.bf16.msra.mxu0 %v683_v41 }
  0xf9   :  { %v164_v42 = vpop.f32.mrb[0].mxu0 }
  0xfa   :  { %v166_v43 = vpop.f32.mrb[1].mxu0 }
 0x103   :  { %v310_v47 = vpop.f32.mrb[2].mxu1 }
 0x104   :  { %v311_v49 = vadd.f32 %v310_v47, %v164_v42  ;;  %v312_v50 = vpop.f32.mrb[3].mxu1 }
 0x105   :  { %v313_v51 = vadd.f32 %v312_v50, %v166_v43 }
 0x106   :  { %v408_v52 = vadd.f32 %v391_v46, %v311_v49 }
 0x107   :  { %v409_v53 = vadd.f32 %v395_v48, %v313_v51 }
 0x108   :  { %v558_v54 = vmul.f32 -1.442695, %v408_v52 }
 0x109   :  { %v559_v55 = vmul.f32 -1.442695, %v409_v53 }
 0x10a   :  { %697 = vpow2.f32 %v558_v54 }
 0x10b   :  { %699 = vpow2.f32 %v559_v55 }
 0x113   :  { %v381_v58 = vpop.f32.mrb[0].mxu1 }
 0x114   :  { %v698_v0 = vpop.eup %697  ;;  %v410_v59 = vadd.f32 %v399_v57, %v381_v58  ;;  %v383_v60 = vpop.f32.mrb[1].mxu1 }
 0x115   :  { %v700_v61 = vpop.eup %699  ;;  %v415_v62 = vadd.f32 1.0, %v698_v0  ;;  %v411_v63 = vadd.f32 %v403_v29, %v383_v60 }
 0x116   :  { %v421_v1 = vadd.f32 1.0, %v700_v61  ;;  %701 = vtanh.f32 %v410_v59 }
 0x117   :  { %703 = vrcp.f32 %v415_v62 }
 0x118   :  { %705 = vrcp.f32 %v421_v1 }
 0x120   :  { %v702_v2 = vpop.eup %701 }
 0x121   :  { %v704_v4 = vpop.eup %703 }
 0x122   :  { %v706_v5 = vpop.eup %705  ;;  %v433_v6 = vmul.f32 %v704_v4, %v702_v2 }
 0x123   :  { %v432_v7 = vmul.f32 %v706_v5, %v431_v3 }
 0x125   :  { %v434_v8 = vadd.f32 %v433_v6, %v432_v7 }
 0x127   :  { %611 = vmatmul.mubr.f32.vlgmr.msra.gmra.mrb[2].mxu0 %v434_v8  ;;  %435 = vst [vmem:[#allocation6] sm:$0xff] %v434_v8 }
 0x128   :  { %746 = shalt.err (!%p743_p12)
}
 0x129   :  { %s747_s2 = scalar_lea.hbm %s1000_s8, 128 }
 0x12a   :  { %p748_p13 = scmp.ne.s32.totalorder %s1000_s8, %s747_s2  ;;  %p751_p0 = scmp.lt.u32.totalorder %s747_s2, %s1000_s8 }
 0x12c   :  { %p753_p1 = pnand %p751_p0, %p748_p13 }
 0x12e   :  { %756 = shalt.err (!%p753_p1)
}
 0x12f   :  { %544 = dma.vmem_to_hbm [thread:$0]  %s542_s15, 128, %s1000_s8, [#allocation7]   ;;  %v560_v9 = vmul.f32 -1.442695, %v411_v63 }
 0x130   :  { %s792_s3 = smov [#allocation5]  }
 0x131   :  { %707 = vpow2.f32 %v560_v9  ;;  %s531_s1 = sshll.u32 %s792_s3, 4  ;;  %s532_s1 = int_to_ptr.vmem [resolvable:$true] %s531_s1 }
 0x132   :  { %s757_s25 = scalar_lea.vmem %s532_s1, 128  ;;  %p762_p3 = scmp.lt.s32.totalorder %s532_s1, %s532_s1 }
 0x133   :  { %p758_p2 = scmp.ne.s32.totalorder %s532_s1, %s757_s25  ;;  %p763_p4 = scmp.lt.s32.totalorder %s757_s25, %s757_s25 }
 0x135   :  { %p764_p5 = por %p763_p4, %p762_p3 }
 0x137   :  { %p765_p6 = pnand %p764_p5, %p758_p2 }
 0x13b   :  { %v708_v10 = vpop.eup %707 }
 0x13c   :  { %v428_v11 = vadd.f32 1.0, %v708_v10 }
 0x13e   :  { %709 = vrcp.f32 %v428_v11 }
 0x148   :  { %v710_v14 = vpop.eup %709 }
 0x1fa   :  { %v518_v12 = vpop.f32.mrb[2].mxu0 }
 0x1fb   :  { %711 = vtanh.f32 %v518_v12  ;;  %v612_v13 = vpop.f32.mrb[3].mxu0 }
 0x205   :  { %v712_v15 = vpop.eup %711 }
 0x206   :  { %v523_v16 = vmul.f32 %v712_v15, %v710_v14 }
 0x208   :  { %524 = vst.msk [vmem:[#allocation5] sm:$0xff] %vm94_vm0, %v523_v16 }
 0x209   :  { %768 = shalt.err (!%p765_p6)
}
 0x20a   :  { %s769_s27 = scalar_lea.hbm %s999_s7, 128 }
 0x20b   :  { %p770_p7 = scmp.ne.s32.totalorder %s999_s7, %s769_s27  ;;  %p773_p8 = scmp.lt.u32.totalorder %s769_s27, %s999_s7 }
 0x20d   :  { %p775_p9 = pnand %p773_p8, %p770_p7 }
 0x20f   :  { %778 = shalt.err (!%p775_p9)
}
 0x210   :  { %534 = dma.vmem_to_hbm [thread:$0]  %s532_s1, 128, %s999_s7, [#allocation4]  }
 0x211   :  { %781 = dma.done.wait [#allocation4], 128  }
 0x212   :  { %782 = vsyncadd [#allocation4], 4294967168 }
 0x213   :  { %783 = dma.done.wait [#allocation7], 128  }
 0x214   :  { %784 = vsyncadd [#allocation7], 4294967168 }
 0x215   :  { %551 = vsyncpa [#allocation3], 1 }
 0x216   :  { %552 = vsyncpa [#allocation4], 1 }
 0x217   :  { %553 = vsyncpa [#allocation7], 1 }

</bundles_post_ra>
